<compile_context>
chip_gen: v5e
topology: v5e:2x2
jax: 0.10.0
libtpu: 0.0.40
codegen_flags: <defaults>
</compile_context>

<pallas_src>
import jax
import jax.numpy as jnp
from jax import lax
from jax.experimental import pallas as pl
from jax.experimental.pallas import tpu as pltpu

FEATURE_ON_X_AXIS = 4
FEATURE_ON_Y_AXIS = 4
MAX_LENGTH = FEATURE_ON_X_AXIS * FEATURE_ON_Y_AXIS  # 16

HIDDEN_SIZE = 32
OUTPUT_SIZE = 32

_LANE = 128


def _round_up(x, m):
    return ((x + m - 1) // m) * m


def _attn_decoder_kernel(tok_ref,   # (T,)   int32, SMEM (scalar prefetch)
                         hid_ref,   # (1, H) initial hidden
                         enc_ref,   # (ML, H) encoder outputs
                         w1_ref,    # (max(V,H), H+V)  [embedding | out_W.T]
                         w2_ref,    # (2H, 5H+ML)      [GRU block | combine | attn]
                         b_ref,     # (1, 5H+ML+V)     fused bias row
                         out_ref,   # (1, 1, 128)      [logp | h_new | attn_w | pad]
                         h_scr):    # (1, H) VMEM scratch: carried hidden state
    t = pl.program_id(0)
    H = hid_ref.shape[1]
    ML = enc_ref.shape[0]
    V = w1_ref.shape[1] - H

    # Column offsets inside the packed slabs.
    GRU_OFF, GRU_W = 0, 4 * H       # [Wih.T;Whh.T | (0;Whh_n.T)]
    COMB_OFF = 4 * H                # attn_combine
    ATTN_OFF = 5 * H                # attn
    OUTB_OFF = 5 * H + ML           # out bias (bias slab only)

    @pl.when(t == 0)
    def _():
        h_scr[...] = hid_ref[...]

    h = h_scr[...]                  # (1, H)  carried hidden
    idx = tok_ref[t]                # scalar token id

    # --- embedding row gather: exact masked select + sublane reduce (no MXU) ---
    ids = lax.broadcasted_iota(jnp.int32, (V, H), 0)
    emb_tab = w1_ref[0:V, 0:H]
    embedded = jnp.sum(jnp.where(ids == idx, emb_tab, 0.0),
                       axis=0, keepdims=True)                       # (1, H)
    # TODO(synk): nn.Dropout is identity in eval mode; training-time dropout omitted.

    # --- attn_weights = softmax(Linear(cat(embedded, hidden))) ---
    cat_eh = jnp.concatenate([embedded, h], axis=1)                 # (1, 2H)
    attn_logits = (jnp.dot(cat_eh, w2_ref[:, ATTN_OFF:ATTN_OFF + ML],
                           preferred_element_type=jnp.float32)
                   + b_ref[:, ATTN_OFF:ATTN_OFF + ML])              # (1, ML)
    m = jnp.max(attn_logits, axis=1, keepdims=True)
    e = jnp.exp(attn_logits - m)
    s = jnp.sum(e, axis=1, keepdims=True)
    inv = pl.reciprocal(s, approx=True)        # EUP vrcp
    inv = inv * (2.0 - s * inv)                # one Newton step -> ~f32 accuracy
    attn_w = e * inv                                                # (1, ML)

    # --- attn_applied = bmm(attn_weights, encoder_outputs) ---
    attn_applied = jnp.dot(attn_w, enc_ref[...],
                           preferred_element_type=jnp.float32)      # (1, H)

    # --- output = relu(attn_combine(cat(embedded, attn_applied))) ---
    cat_ea = jnp.concatenate([embedded, attn_applied], axis=1)      # (1, 2H)
    x = jnp.maximum(
        jnp.dot(cat_ea, w2_ref[:, COMB_OFF:COMB_OFF + H],
                preferred_element_type=jnp.float32)
        + b_ref[:, COMB_OFF:COMB_OFF + H], 0.0)                     # (1, H)

    # --- single-step GRU, ONE fused (1,2H)@(2H,4H) dot ---
    # cols 0:3H  -> gi + gh  (bias = bih + bhh)
    # cols 3H:4H -> gh_n     (bias = bhh_n)      so the r*gh_n term stays exact
    cat_xh = jnp.concatenate([x, h], axis=1)                        # (1, 2H)
    g = (jnp.dot(cat_xh, w2_ref[:, GRU_OFF:GRU_OFF + GRU_W],
                 preferred_element_type=jnp.float32)
         + b_ref[:, GRU_OFF:GRU_OFF + GRU_W])                       # (1, 4H)
    r = jax.nn.sigmoid(g[:, 0:H])
    z = jax.nn.sigmoid(g[:, H:2 * H])
    gh_n = g[:, 3 * H:4 * H]                    # Whh_n h + bhh_n
    gi_n = g[:, 2 * H:3 * H] - gh_n             # Wih_n x + bih_n
    n = jnp.tanh(gi_n + r * gh_n)
    h_new = (1.0 - z) * n + z * h
    h_scr[...] = h_new

    # --- log_softmax(out(h_new)) ---
    out_logits = (jnp.dot(h_new, w1_ref[0:H, H:H + V],
                          preferred_element_type=jnp.float32)
                  + b_ref[:, OUTB_OFF:OUTB_OFF + V])                # (1, V)
    mo = jnp.max(out_logits, axis=1, keepdims=True)
    shifted = out_logits - mo
    lse = jnp.log(jnp.sum(jnp.exp(shifted), axis=1, keepdims=True))
    logp = shifted - lse

    # --- one lane-dense fused store: [logp | h_new | attn_w | zero pad] ---
    pad = out_ref.shape[2] - (V + H + ML)
    row = jnp.concatenate([logp, h_new, attn_w,
                           jnp.zeros((1, pad), jnp.float32)], axis=1)
    out_ref[...] = row.reshape(out_ref.shape)


def pack_params(params, hidden_size=HIDDEN_SIZE, output_size=OUTPUT_SIZE,
                max_length=MAX_LENGTH):
    """One-time repack of PyTorch-layout weights into 3 VMEM slabs.

    Hoisted out of the per-step call so no transposes/slices happen per step."""
    H, V, ML = hidden_size, output_size, max_length
    f32 = jnp.float32

    wih_t = params["gru_w_ih"].T.astype(f32)     # (H, 3H)   gates r|z|n
    whh_t = params["gru_w_hh"].T.astype(f32)     # (H, 3H)
    comb_t = params["combine_W"].T.astype(f32)   # (2H, H)
    attn_t = params["attn_W"].T.astype(f32)      # (2H, ML)
    out_t = params["out_W"].T.astype(f32)        # (H, V)

    # w2: (2H, 4H + H + ML)  columns = [GRU block | combine | attn]
    w2 = jnp.zeros((2 * H, 5 * H + ML), f32)
    w2 = w2.at[0:H, 0:3 * H].set(wih_t)
    w2 = w2.at[H:2 * H, 0:3 * H].set(whh_t)
    w2 = w2.at[H:2 * H, 3 * H:4 * H].set(whh_t[:, 2 * H:3 * H])   # gh_n extractor
    w2 = w2.at[:, 4 * H:5 * H].set(comb_t)
    w2 = w2.at[:, 5 * H:5 * H + ML].set(attn_t)

    # w1: (max(V,H), H + V)  columns = [embedding | out_W.T]
    R = max(V, H)
    w1 = jnp.zeros((R, H + V), f32)
    w1 = w1.at[0:V, 0:H].set(params["embedding"].astype(f32))
    w1 = w1.at[0:H, H:H + V].set(out_t)

    # bias row: [gru (bih+bhh | bhh_n) | comb_b | attn_b | out_b]
    b = jnp.zeros((1, 5 * H + ML + V), f32)
    b = b.at[0, 0:3 * H].set((params["gru_b_ih"] + params["gru_b_hh"]).astype(f32))
    b = b.at[0, 3 * H:4 * H].set(params["gru_b_hh"][2 * H:3 * H].astype(f32))
    b = b.at[0, 4 * H:5 * H].set(params["combine_b"].astype(f32))
    b = b.at[0, 5 * H:5 * H + ML].set(params["attn_b"].astype(f32))
    b = b.at[0, 5 * H + ML:5 * H + ML + V].set(params["out_b"].astype(f32))

    return {"w1": w1, "w2": w2, "b": b}


def _attn_decoder_decode_impl(packed, tokens, hidden, encoder_outputs):
    """Teacher-forced multi-step decode in ONE kernel launch.

    tokens: (T,) int32; hidden: (1,1,H); encoder_outputs: (ML,H)
    Returns (logp (T,V), final hidden (1,1,H), attn_weights (T,ML))."""
    w1, w2, b = packed["w1"], packed["w2"], packed["b"]
    ML, H = encoder_outputs.shape
    V = w1.shape[1] - H
    T = tokens.shape[0]
    out_cols = _round_up(V + H + ML, _LANE)

    tokens = jnp.asarray(tokens, jnp.int32).reshape(T)
    hid2d = hidden.reshape(1, H).astype(jnp.float32)
    enc = encoder_outputs.astype(jnp.float32)

    fused = pl.pallas_call(
        _attn_decoder_kernel,
        out_shape=jax.ShapeDtypeStruct((T, 1, out_cols), jnp.float32),
        grid_spec=pltpu.PrefetchScalarGridSpec(
            num_scalar_prefetch=1,
            grid=(T,),
            in_specs=[
                pl.BlockSpec((1, H), lambda t, toks: (0, 0)),    # initial hidden
                pl.BlockSpec((ML, H), lambda t, toks: (0, 0)),   # encoder outputs
                pl.BlockSpec(w1.shape, lambda t, toks: (0, 0)),  # [emb | out_W.T]
                pl.BlockSpec(w2.shape, lambda t, toks: (0, 0)),  # [gru | comb | attn]
                pl.BlockSpec(b.shape, lambda t, toks: (0, 0)),   # fused biases
            ],
            out_specs=pl.BlockSpec((1, 1, out_cols), lambda t, toks: (t, 0, 0)),
            scratch_shapes=[pltpu.VMEM((1, H), jnp.float32)],    # carried hidden
        ),
        compiler_params=pltpu.CompilerParams(
            dimension_semantics=("arbitrary",)),                 # sequential carry
    )(tokens, hid2d, enc, w1, w2, b)

    fused = fused[:, 0, :]                       # (T, out_cols)
    logp = fused[:, 0:V]
    h_seq = fused[:, V:V + H]
    attn_w = fused[:, V + H:V + H + ML]
    return logp, h_seq[T - 1].reshape(1, 1, H), attn_w


attn_decoder_decode = jax.jit(_attn_decoder_decode_impl)


def attn_decoder_forward(packed, input_idx, hidden, encoder_outputs):
    """Single-step forward, same semantics as the PyTorch module."""
    tokens = jnp.asarray(input_idx, jnp.int32).reshape(1)
    return attn_decoder_decode(packed, tokens, hidden, encoder_outputs)


def _reference_forward(params, input_idx, hidden, encoder_outputs):
    """Pure-JAX reference mirroring the PyTorch forward (eval mode)."""
    H = HIDDEN_SIZE
    embedded = params["embedding"][input_idx].reshape(1, H)
    h = hidden.reshape(1, H)
    cat1 = jnp.concatenate([embedded, h], axis=1)
    attn_logits = cat1 @ params["attn_W"].T + params["attn_b"]
    attn_w = jax.nn.softmax(attn_logits, axis=1)
    attn_applied = attn_w @ encoder_outputs
    cat2 = jnp.concatenate([embedded, attn_applied], axis=1)
    x = jax.nn.relu(cat2 @ params["combine_W"].T + params["combine_b"])
    gi = x @ params["gru_w_ih"].T + params["gru_b_ih"]
    gh = h @ params["gru_w_hh"].T + params["gru_b_hh"]
    r = jax.nn.sigmoid(gi[:, :H] + gh[:, :H])
    z = jax.nn.sigmoid(gi[:, H:2 * H] + gh[:, H:2 * H])
    n = jnp.tanh(gi[:, 2 * H:] + r * gh[:, 2 * H:])
    h_new = (1.0 - z) * n + z * h
    logits = h_new @ params["out_W"].T + params["out_b"]
    logp = jax.nn.log_softmax(logits, axis=1)
    return logp, h_new.reshape(1, 1, H), attn_w


def init_params(key, hidden_size=HIDDEN_SIZE, output_size=OUTPUT_SIZE,
                max_length=MAX_LENGTH):
    H, V, ML = hidden_size, output_size, max_length
    keys = jax.random.split(key, 12)
    s = 0.1
    return {
        "embedding": s * jax.random.normal(keys[0], (V, H), jnp.float32),
        "attn_W": s * jax.random.normal(keys[1], (ML, 2 * H), jnp.float32),
        "attn_b": s * jax.random.normal(keys[2], (ML,), jnp.float32),
        "combine_W": s * jax.random.normal(keys[3], (H, 2 * H), jnp.float32),
        "combine_b": s * jax.random.normal(keys[4], (H,), jnp.float32),
        "gru_w_ih": s * jax.random.normal(keys[5], (3 * H, H), jnp.float32),
        "gru_w_hh": s * jax.random.normal(keys[6], (3 * H, H), jnp.float32),
        "gru_b_ih": s * jax.random.normal(keys[7], (3 * H,), jnp.float32),
        "gru_b_hh": s * jax.random.normal(keys[8], (3 * H,), jnp.float32),
        "out_W": s * jax.random.normal(keys[9], (V, H), jnp.float32),
        "out_b": s * jax.random.normal(keys[10], (V,), jnp.float32),
    }


if __name__ == "__main__":
    key = jax.random.PRNGKey(0)
    pkey, hkey, ekey, tkey = jax.random.split(key, 4)
    params = init_params(pkey)
    packed = pack_params(params)   # one-time weight packing (not per step)

    hidden = 0.1 * jax.random.normal(hkey, (1, 1, HIDDEN_SIZE), jnp.float32)
    encoder_outputs = 0.1 * jax.random.normal(ekey, (MAX_LENGTH, HIDDEN_SIZE),
                                              jnp.float32)

    # --- single-step forward: exactly the PyTorch module semantics ---
    input_idx = jnp.int32(3)
    logp, h_new, attn_w = attn_decoder_forward(packed, input_idx, hidden,
                                               encoder_outputs)
    jax.block_until_ready((logp, h_new, attn_w))

    ref_logp, ref_h, ref_aw = _reference_forward(params, input_idx, hidden,
                                                 encoder_outputs)
    assert logp.shape == (1, OUTPUT_SIZE)
    assert h_new.shape == (1, 1, HIDDEN_SIZE)
    assert attn_w.shape == (1, MAX_LENGTH)
    assert jnp.allclose(logp, ref_logp, atol=2e-5)
    assert jnp.allclose(h_new, ref_h, atol=2e-5)
    assert jnp.allclose(attn_w, ref_aw, atol=2e-5)

    # --- multi-step teacher-forced decode: ONE launch, weights resident ---
    T = 8
    tokens = jax.random.randint(tkey, (T,), 0, OUTPUT_SIZE, jnp.int32)
    logp_seq, h_T, attn_seq = attn_decoder_decode(packed, tokens, hidden,
                                                  encoder_outputs)
    jax.block_until_ready((logp_seq, h_T, attn_seq))

    h_ref = hidden
    ref_lp, ref_aw_list = [], []
    for i in range(T):
        lp_i, h_ref, aw_i = _reference_forward(params, tokens[i], h_ref,
                                               encoder_outputs)
        ref_lp.append(lp_i)
        ref_aw_list.append(aw_i)
    ref_lp = jnp.concatenate(ref_lp, axis=0)
    ref_aw_seq = jnp.concatenate(ref_aw_list, axis=0)

    assert logp_seq.shape == (T, OUTPUT_SIZE)
    assert attn_seq.shape == (T, MAX_LENGTH)
    assert jnp.allclose(logp_seq, ref_lp, atol=1e-4)
    assert jnp.allclose(attn_seq, ref_aw_seq, atol=1e-4)
    assert jnp.allclose(h_T, h_ref, atol=1e-4)

    print("KERNEL_OK")
</pallas_src>

<mosaic_0001>
module attributes {stable_mosaic.version = 11 : i64} {
  func.func @_attn_decoder_kernel(%arg0: i32, %arg1: memref<1xi32, #tpu.memory_space<smem>>, %arg2: memref<1x32xf32, #tpu.memory_space<vmem>>, %arg3: memref<16x32xf32, #tpu.memory_space<vmem>>, %arg4: memref<32x64xf32, #tpu.memory_space<vmem>>, %arg5: memref<64x176xf32, #tpu.memory_space<vmem>>, %arg6: memref<1x208xf32, #tpu.memory_space<vmem>>, %arg7: memref<1x1x128xf32, #tpu.memory_space<vmem>>, %arg8: memref<1x32xf32, #tpu.memory_space<vmem>>) attributes {dimension_semantics = [#tpu.dimension_semantics<arbitrary>], iteration_bounds = array<i64: 1>, scalar_prefetch = 1 : i64, scratch_operands = 1 : i64, tpu.core_type = #tpu.core_type<tc>, window_params = [{pipeline_mode = #tpu.pipeline_mode<synchronous>, transform_indices = @transform_0, window_bounds = array<i64: 1, 32>}, {pipeline_mode = #tpu.pipeline_mode<synchronous>, transform_indices = @transform_1, window_bounds = array<i64: 16, 32>}, {pipeline_mode = #tpu.pipeline_mode<synchronous>, transform_indices = @transform_2, window_bounds = array<i64: 32, 64>}, {pipeline_mode = #tpu.pipeline_mode<synchronous>, transform_indices = @transform_3, window_bounds = array<i64: 64, 176>}, {pipeline_mode = #tpu.pipeline_mode<synchronous>, transform_indices = @transform_4, window_bounds = array<i64: 1, 208>}, {transform_indices = @transform_5, window_bounds = array<i64: 1, 1, 128>}]} {
    %c0_i32 = arith.constant 0 : i32
    %0 = arith.cmpi eq, %arg0, %c0_i32 : i32
    %1 = arith.extui %0 : i1 to i32
    %c0_i32_0 = arith.constant 0 : i32
    %2 = arith.cmpi ne, %1, %c0_i32_0 : i32
    scf.if %2 {
      %c0_39 = arith.constant 0 : index
      %c0_40 = arith.constant 0 : index
      %89 = vector.load %arg2[%c0_39, %c0_40] : memref<1x32xf32, #tpu.memory_space<vmem>>, vector<1x32xf32>
      %c0_41 = arith.constant 0 : index
      %c0_42 = arith.constant 0 : index
      %90 = vector.load %arg8[%c0_41, %c0_42] : memref<1x32xf32, #tpu.memory_space<vmem>>, vector<1x32xf32>
      tpu.vector_store %arg8[%c0_41, %c0_42], %89 {strides = array<i32>} : memref<1x32xf32, #tpu.memory_space<vmem>>, vector<1x32xf32>,
    } else {
    }
    %c0 = arith.constant 0 : index
    %c0_1 = arith.constant 0 : index
    %3 = vector.load %arg8[%c0, %c0_1] : memref<1x32xf32, #tpu.memory_space<vmem>>, vector<1x32xf32>
    %4 = arith.index_cast %arg0 : i32 to index
    %5 = memref.load %arg1[%4] : memref<1xi32, #tpu.memory_space<smem>>
    %6 = tpu.iota {dimensions = array<i32: 0>} : vector<32x32xi32>
    %c0_2 = arith.constant 0 : index
    %c0_3 = arith.constant 0 : index
    %7 = vector.load %arg4[%c0_2, %c0_3] : memref<32x64xf32, #tpu.memory_space<vmem>>, vector<32x32xf32>
    %8 = vector.broadcast %5 : i32 to vector<32x32xi32>
    %9 = arith.cmpi eq, %6, %8 : vector<32x32xi32>
    %cst = arith.constant 0.000000e+00 : f32
    %10 = vector.broadcast %cst : f32 to vector<32x32xf32>
    %11 = arith.select %9, %7, %10 : vector<32x32xi1>, vector<32x32xf32>
    %cst_4 = arith.constant dense<0.000000e+00> : vector<32xf32>
    %12 = vector.multi_reduction <add>, %11, %cst_4 [0] : vector<32x32xf32> to vector<32xf32>
    %13 = vector.shape_cast %12 : vector<32xf32> to vector<1x32xf32>
    %14 = tpu.concatenate %13, %3 in 1 : vector<1x32xf32>, vector<1x32xf32> -> vector<1x64xf32>
    %c0_5 = arith.constant 0 : index
    %c160 = arith.constant 160 : index
    %15 = vector.load %arg5[%c0_5, %c160] : memref<64x176xf32, #tpu.memory_space<vmem>>, vector<64x16xf32>
    %cst_6 = arith.constant dense<0.000000e+00> : vector<1x16xf32>
    %16 = tpu.matmul %14, %15, %cst_6 {dimension_numbers = #tpu.dot_dimension_numbers<[1], [0], [0], [1], [0, 0, 1, 1], [], []>} : vector<1x64xf32>, vector<64x16xf32>, vector<1x16xf32> -> vector<1x16xf32>
    %c0_7 = arith.constant 0 : index
    %c160_8 = arith.constant 160 : index
    %17 = vector.load %arg6[%c0_7, %c160_8] : memref<1x208xf32, #tpu.memory_space<vmem>>, vector<1x16xf32>
    %18 = arith.addf %16, %17 : vector<1x16xf32>
    %cst_9 = arith.constant dense<0xFF800000> : vector<1xf32>
    %19 = vector.multi_reduction <maximumf>, %18, %cst_9 [1] : vector<1x16xf32> to vector<1xf32>
    %20 = vector.shape_cast %19 : vector<1xf32> to vector<1x1xf32>
    %21 = vector.broadcast %20 : vector<1x1xf32> to vector<1x16xf32>
    %22 = arith.subf %18, %21 : vector<1x16xf32>
    %23 = math.exp %22 : vector<1x16xf32>
    %cst_10 = arith.constant dense<0.000000e+00> : vector<1xf32>
    %24 = vector.multi_reduction <add>, %23, %cst_10 [1] : vector<1x16xf32> to vector<1xf32>
    %25 = vector.shape_cast %24 : vector<1xf32> to vector<1x1xf32>
    %26 = tpu.reciprocal %25 {approx = true} : vector<1x1xf32> -> vector<1x1xf32>
    %27 = arith.mulf %25, %26 : vector<1x1xf32>
    %cst_11 = arith.constant 2.000000e+00 : f32
    %28 = vector.broadcast %cst_11 : f32 to vector<1x1xf32>
    %29 = arith.subf %28, %27 : vector<1x1xf32>
    %30 = arith.mulf %26, %29 : vector<1x1xf32>
    %31 = vector.broadcast %30 : vector<1x1xf32> to vector<1x16xf32>
    %32 = arith.mulf %23, %31 : vector<1x16xf32>
    %c0_12 = arith.constant 0 : index
    %c0_13 = arith.constant 0 : index
    %33 = vector.load %arg3[%c0_12, %c0_13] : memref<16x32xf32, #tpu.memory_space<vmem>>, vector<16x32xf32>
    %cst_14 = arith.constant dense<0.000000e+00> : vector<1x32xf32>
    %34 = tpu.matmul %32, %33, %cst_14 {dimension_numbers = #tpu.dot_dimension_numbers<[1], [0], [0], [1], [0, 0, 1, 1], [], []>} : vector<1x16xf32>, vector<16x32xf32>, vector<1x32xf32> -> vector<1x32xf32>
    %35 = tpu.concatenate %13, %34 in 1 : vector<1x32xf32>, vector<1x32xf32> -> vector<1x64xf32>
    %c0_15 = arith.constant 0 : index
    %c128 = arith.constant 128 : index
    %36 = vector.load %arg5[%c0_15, %c128] : memref<64x176xf32, #tpu.memory_space<vmem>>, vector<64x32xf32>
    %cst_16 = arith.constant dense<0.000000e+00> : vector<1x32xf32>
    %37 = tpu.matmul %35, %36, %cst_16 {dimension_numbers = #tpu.dot_dimension_numbers<[1], [0], [0], [1], [0, 0, 1, 1], [], []>} : vector<1x64xf32>, vector<64x32xf32>, vector<1x32xf32> -> vector<1x32xf32>
    %c0_17 = arith.constant 0 : index
    %c128_18 = arith.constant 128 : index
    %38 = vector.load %arg6[%c0_17, %c128_18] : memref<1x208xf32, #tpu.memory_space<vmem>>, vector<1x32xf32>
    %39 = arith.addf %37, %38 : vector<1x32xf32>
    %cst_19 = arith.constant 0.000000e+00 : f32
    %40 = vector.broadcast %cst_19 : f32 to vector<1x32xf32>
    %41 = arith.maximumf %39, %40 : vector<1x32xf32>
    %42 = tpu.concatenate %41, %3 in 1 : vector<1x32xf32>, vector<1x32xf32> -> vector<1x64xf32>
    %c0_20 = arith.constant 0 : index
    %c0_21 = arith.constant 0 : index
    %43 = vector.load %arg5[%c0_20, %c0_21] : memref<64x176xf32, #tpu.memory_space<vmem>>, vector<64x128xf32>
    %cst_22 = arith.constant dense<0.000000e+00> : vector<1x128xf32>
    %44 = tpu.matmul %42, %43, %cst_22 {dimension_numbers = #tpu.dot_dimension_numbers<[1], [0], [0], [1], [0, 0, 1, 1], [], []>} : vector<1x64xf32>, vector<64x128xf32>, vector<1x128xf32> -> vector<1x128xf32>
    %c0_23 = arith.constant 0 : index
    %c0_24 = arith.constant 0 : index
    %45 = vector.load %arg6[%c0_23, %c0_24] : memref<1x208xf32, #tpu.memory_space<vmem>>, vector<1x128xf32>
    %46 = arith.addf %44, %45 : vector<1x128xf32>
    %47 = vector.extract_strided_slice %46 {offsets = [0, 0], sizes = [1, 32], strides = [1, 1]} : vector<1x128xf32> to vector<1x32xf32>
    %48 = arith.negf %47 : vector<1x32xf32>
    %49 = math.exp %48 : vector<1x32xf32>
    %cst_25 = arith.constant 1.000000e+00 : f32
    %50 = vector.broadcast %cst_25 : f32 to vector<1x32xf32>
    %51 = arith.addf %50, %49 : vector<1x32xf32>
    %52 = arith.divf %50, %51 : vector<1x32xf32>
    %53 = vector.extract_strided_slice %46 {offsets = [0, 32], sizes = [1, 32], strides = [1, 1]} : vector<1x128xf32> to vector<1x32xf32>
    %54 = arith.negf %53 : vector<1x32xf32>
    %55 = math.exp %54 : vector<1x32xf32>
    %cst_26 = arith.constant 1.000000e+00 : f32
    %56 = vector.broadcast %cst_26 : f32 to vector<1x32xf32>
    %57 = arith.addf %56, %55 : vector<1x32xf32>
    %58 = arith.divf %56, %57 : vector<1x32xf32>
    %59 = vector.extract_strided_slice %46 {offsets = [0, 96], sizes = [1, 32], strides = [1, 1]} : vector<1x128xf32> to vector<1x32xf32>
    %60 = vector.extract_strided_slice %46 {offsets = [0, 64], sizes = [1, 32], strides = [1, 1]} : vector<1x128xf32> to vector<1x32xf32>
    %61 = arith.subf %60, %59 : vector<1x32xf32>
    %62 = arith.mulf %52, %59 : vector<1x32xf32>
    %63 = arith.addf %61, %62 : vector<1x32xf32>
    %64 = math.tanh %63 : vector<1x32xf32>
    %cst_27 = arith.constant 1.000000e+00 : f32
    %65 = vector.broadcast %cst_27 : f32 to vector<1x32xf32>
    %66 = arith.subf %65, %58 : vector<1x32xf32>
    %67 = arith.mulf %66, %64 : vector<1x32xf32>
    %68 = arith.mulf %58, %3 : vector<1x32xf32>
    %69 = arith.addf %67, %68 : vector<1x32xf32>
    %c0_28 = arith.constant 0 : index
    %c0_29 = arith.constant 0 : index
    %70 = vector.load %arg8[%c0_28, %c0_29] : memref<1x32xf32, #tpu.memory_space<vmem>>, vector<1x32xf32>
    tpu.vector_store %arg8[%c0_28, %c0_29], %69 {strides = array<i32>} : memref<1x32xf32, #tpu.memory_space<vmem>>, vector<1x32xf32>,
    %c0_30 = arith.constant 0 : index
    %c32 = arith.constant 32 : index
    %71 = vector.load %arg4[%c0_30, %c32] : memref<32x64xf32, #tpu.memory_space<vmem>>, vector<32x32xf32>
    %cst_31 = arith.constant dense<0.000000e+00> : vector<1x32xf32>
    %72 = tpu.matmul %69, %71, %cst_31 {dimension_numbers = #tpu.dot_dimension_numbers<[1], [0], [0], [1], [0, 0, 1, 1], [], []>} : vector<1x32xf32>, vector<32x32xf32>, vector<1x32xf32> -> vector<1x32xf32>
    %c0_32 = arith.constant 0 : index
    %c176 = arith.constant 176 : index
    %73 = vector.load %arg6[%c0_32, %c176] : memref<1x208xf32, #tpu.memory_space<vmem>>, vector<1x32xf32>
    %74 = arith.addf %72, %73 : vector<1x32xf32>
    %cst_33 = arith.constant dense<0xFF800000> : vector<1xf32>
    %75 = vector.multi_reduction <maximumf>, %74, %cst_33 [1] : vector<1x32xf32> to vector<1xf32>
    %76 = vector.shape_cast %75 : vector<1xf32> to vector<1x1xf32>
    %77 = vector.broadcast %76 : vector<1x1xf32> to vector<1x32xf32>
    %78 = arith.subf %74, %77 : vector<1x32xf32>
    %79 = math.exp %78 : vector<1x32xf32>
    %cst_34 = arith.constant dense<0.000000e+00> : vector<1xf32>
    %80 = vector.multi_reduction <add>, %79, %cst_34 [1] : vector<1x32xf32> to vector<1xf32>
    %81 = vector.shape_cast %80 : vector<1xf32> to vector<1x1xf32>
    %82 = math.log %81 : vector<1x1xf32>
    %83 = vector.broadcast %82 : vector<1x1xf32> to vector<1x32xf32>
    %84 = arith.subf %78, %83 : vector<1x32xf32>
    %cst_35 = arith.constant 0.000000e+00 : f32
    %85 = vector.broadcast %cst_35 : f32 to vector<1x48xf32>
    %86 = tpu.concatenate %84, %69, %32, %85 in 1 : vector<1x32xf32>, vector<1x32xf32>, vector<1x16xf32>, vector<1x48xf32> -> vector<1x128xf32>
    %87 = vector.shape_cast %86 : vector<1x128xf32> to vector<1x1x128xf32>
    %c0_36 = arith.constant 0 : index
    %c0_37 = arith.constant 0 : index
    %c0_38 = arith.constant 0 : index
    %88 = vector.load %arg7[%c0_36, %c0_37, %c0_38] : memref<1x1x128xf32, #tpu.memory_space<vmem>>, vector<1x1x128xf32>
    tpu.vector_store %arg7[%c0_36, %c0_37, %c0_38], %87 {strides = array<i32>} : memref<1x1x128xf32, #tpu.memory_space<vmem>>, vector<1x1x128xf32>,
    return
  }
  func.func @transform_0(%arg0: i32, %arg1: memref<1xi32, #tpu.memory_space<smem>>) -> (i32, i32) {
    %c0_i32 = arith.constant 0 : i32
    %c0_i32_0 = arith.constant 0 : i32
    %c0_i32_1 = arith.constant 0 : i32
    return %c0_i32, %c0_i32_0 : i32, i32
  }
  func.func @transform_1(%arg0: i32, %arg1: memref<1xi32, #tpu.memory_space<smem>>) -> (i32, i32) {
    %c0_i32 = arith.constant 0 : i32
    %c0_i32_0 = arith.constant 0 : i32
    %c0_i32_1 = arith.constant 0 : i32
    return %c0_i32, %c0_i32_0 : i32, i32
  }
  func.func @transform_2(%arg0: i32, %arg1: memref<1xi32, #tpu.memory_space<smem>>) -> (i32, i32) {
    %c0_i32 = arith.constant 0 : i32
    %c0_i32_0 = arith.constant 0 : i32
    %c0_i32_1 = arith.constant 0 : i32
    return %c0_i32, %c0_i32_0 : i32, i32
  }
  func.func @transform_3(%arg0: i32, %arg1: memref<1xi32, #tpu.memory_space<smem>>) -> (i32, i32) {
    %c0_i32 = arith.constant 0 : i32
    %c0_i32_0 = arith.constant 0 : i32
    %c0_i32_1 = arith.constant 0 : i32
    return %c0_i32, %c0_i32_0 : i32, i32
  }
  func.func @transform_4(%arg0: i32, %arg1: memref<1xi32, #tpu.memory_space<smem>>) -> (i32, i32) {
    %c0_i32 = arith.constant 0 : i32
    %c0_i32_0 = arith.constant 0 : i32
    %c0_i32_1 = arith.constant 0 : i32
    return %c0_i32, %c0_i32_0 : i32, i32
  }
  func.func @transform_5(%arg0: i32, %arg1: memref<1xi32, #tpu.memory_space<smem>>) -> (i32, i32, i32) {
    %c0_i32 = arith.constant 0 : i32
    %c0_i32_0 = arith.constant 0 : i32
    %c0_i32_1 = arith.constant 0 : i32
    return %arg0, %c0_i32, %c0_i32_0 : i32, i32, i32
  }
}

</mosaic_0001>

<bundles_post_ra>
// kernel: _attn_decoder_decode_impl.1
= control target key start
LH: loop header
LB: loop body
LE: loop exit
PB: predicated region body
PF: predicated region fallthrough
CT: control target
= control target key end

     0   :  { %12 = vsyncpa [#allocation6], 0  ;;  %s682_s0 = inlined_call_operand.<no memory space> [shape: s32[1], index: 0, kind: input, shape index: {}]   ;;  %s683_s1 = inlined_call_operand.vmem [shape: f32[1,32], index: 1, kind: input, shape index: {}]   ;;  %s684_s2 = inlined_call_operand.hbm [shape: f32[16,32], index: 2, kind: input, shape index: {}]   ;;  %s685_s3 = inlined_call_operand.hbm [shape: f32[32,64], index: 3, kind: input, shape index: {}]   ;;  %s686_s4 = inlined_call_operand.hbm [shape: f32[64,176], index: 4, kind: input, shape index: {}]   ;;  %s687_s5 = inlined_call_operand.vmem [shape: f32[1,208], index: 5, kind: input, shape index: {}]   ;;  %s688_s6 = inlined_call_operand.vmem [shape: f32[1,1,128], index: 6, kind: output, shape index: {}]  }
   0x1   :  { %13 = vsyncpa [#allocation8], 0  ;;  %s33_s23 = sshll.u32 %s685_s3, 4  ;;  %s551_s24 = smov [#allocation7]   ;;  %s34_s23 = int_to_ptr.hbm [resolvable:$true] %s33_s23 }
   0x2   :  { %s35_s25 = sshll.u32 %s551_s24, 4  ;;  %s20_s28 = sshll.u32 %s684_s2, 4  ;;  %s36_s25 = int_to_ptr.vmem [resolvable:$true] %s35_s25  ;;  %s21_s28 = int_to_ptr.hbm [resolvable:$true] %s20_s28 }
   0x3   :  { %s552_s29 = smov 128   ;;  %s553_s30 = smov 8  }
   0x4   :  { %41 = dma.hbm_to_vmem [thread:$0]  %s34_s23, 512, %s36_s25, [#allocation8], %s552_s29, %s552_s29, %s553_s30  }
   0x5   :  { %s554_s7 = smov [#allocation5]   ;;  %s46_s11 = sshll.u32 %s686_s4, 4  ;;  %s47_s11 = int_to_ptr.hbm [resolvable:$true] %s46_s11 }
   0x6   :  { %s22_s8 = sshll.u32 %s554_s7, 4  ;;  %s555_s3 = smov [#allocation9]   ;;  %s23_s8 = int_to_ptr.vmem [resolvable:$true] %s22_s8 }
   0x7   :  { %28 = dma.hbm_to_vmem [thread:$0]  %s21_s28, 256, %s23_s8, [#allocation6], %s552_s29, %s552_s29, %s553_s30  }
   0x8   :  { %s48_s12 = sshll.u32 %s555_s3, 4  ;;  %s556_s13 = smov 256   ;;  %s49_s12 = int_to_ptr.vmem [resolvable:$true] %s48_s12 }
   0x9   :  { %s557_s14 = smov 16  }
   0xa   :  { %54 = dma.hbm_to_vmem [thread:$0]  %s47_s11, 2048, %s49_s12, [#allocation8], %s556_s13, %s556_s13, %s557_s14  }
   0xb   :  { %547 = dma.done.wait [#allocation6], 256  }
   0xc   :  { %548 = vsyncadd [#allocation6], 4294967040 }
   0xd   :  { %549 = dma.done.wait [#allocation8], 2560  }
   0xe   :  { %550 = vsyncadd [#allocation8], 4294964736  ;;  %v122_v0 = vld [vmem:[#allocation9 + $0x68] sm:$0xff]  ;;  %v123_v1 = vld [vmem:[#allocation9 + $0x78] sm:$0xff]  ;;  %vm74_vm0 = vcmask 253952   ;;  %s558_s15 = smov 96   ;;  %v78_v14 = vlaneseq  ;;  %v87_v17 = vstv %s682_s0 }
   0xf   :  { %v428_v2 = vpack.i.bf16 %v122_v0, %v123_v1  ;;  %v118_v3 = vld [vmem:[#allocation9 + $0x28] sm:$0xff]  ;;  %v119_v4 = vld [vmem:[#allocation9 + $0x38] sm:$0xff]  ;;  %243 = vmatpush.msra.mxu2 %v123_v1  ;;  %v618_v19 = vld [vmem:[#allocation7] sm:$0xff]  ;;  %vm96_vm3 = vcmask 261120   ;;  %vm162_vm6 = vcmask 523264   ;;  %vm186_vm7 = vcmask 122880  }
  0x10   :  { %v438_v5 = vpack.i.bf16 %v118_v3, %v119_v4  ;;  %v73_v6 = vld [vmem:[%s683_s1] sm:$0x1]  ;;  %v121_v8 = vld [vmem:[#allocation9 + $0x58] sm:$0xff]  ;;  %s559_s1 = smov 32   ;;  %v79_v15 = vshrl.u32 %v78_v14, 7  ;;  %v624_v24 = vld [vmem:[#allocation7 + $0x10] sm:$0xff] }
  0x11   :  { %429 = vrot.lane.b32.xlu0 %v428_v2, %s558_s15  ;;  %75 = vst.msk [vmem:[#allocation2] sm:$0x1] %vm74_vm0, %v73_v6  ;;  %244 = vmatpush.msra.mxu2 %v122_v0  ;;  %v120_v7 = vld [vmem:[#allocation9 + $0x48] sm:$0xff]  ;;  %v117_v10 = vld [vmem:[#allocation9 + $0x18] sm:$0xff]  ;;  %v459_v34 = vld [vmem:[%s687_s5 + $0x1] ss:$0 sm:$0xff] }
  0x12   :  { %439 = vrot.lane.b32.xlu1 %v438_v5, %s558_s15  ;;  %v116_v9 = vld [vmem:[#allocation9 + $0x8] sm:$0xff]  ;;  %v433_v11 = vpack.i.bf16 %v120_v7, %v121_v8  ;;  %v80_v16 = vadd.s32 8, %v79_v15  ;;  %v81_v18 = vadd.s32 16, %v79_v15  ;;  %vm88_vm1 = vcmp.eq.s32.totalorder %v79_v15, %v87_v17  ;;  %v629_v28 = vld [vmem:[#allocation7 + $0x18] sm:$0xff]  ;;  %v201_v2 = vld [vmem:[#allocation5] sm:$0xff]  ;;  %s560_s23 = smov 64  }
  0x13   :  { %245 = vmatpush.msra.mxu2 %v121_v8  ;;  %v443_v12 = vpack.i.bf16 %v116_v9, %v117_v10  ;;  %v620_v20 = vld [vmem:[#allocation7 + $0x8] sm:$0xff]  ;;  %v92_v21 = vsel %vm88_vm1, %v618_v19, 0.0  ;;  %v82_v23 = vadd.s32 24, %v79_v15  ;;  %v202_v1 = vld [vmem:[#allocation5 + $0x8] sm:$0xff]  ;;  %vm203_vm8 = vcmask 130048   ;;  %v260_v14 = vld [vmem:[#allocation9 + $0x30] sm:$0xff] }
  0x14   :  { %vm89_vm2 = vcmp.eq.s32.totalorder %v80_v16, %v87_v17  ;;  %vm90_vm4 = vcmp.eq.s32.totalorder %v81_v18, %v87_v17  ;;  %v97_v25 = vsel %vm96_vm3, %v92_v21, 0.0  ;;  %221 = vmatpush.msra.mxu1 %v202_v1  ;;  %v258_v18 = vld [vmem:[#allocation9 + $0x10] sm:$0xff]  ;;  %v257_v21 = vld [vmem:[#allocation9] sm:$0xff]  ;;  %s561_s26 = smov 80   ;;  %vm402_vm13 = vcmask 654336  }
  0x15   :  { %246 = vmatpush.msra.mxu2 %v120_v7  ;;  %v93_v22 = vsel %vm89_vm2, %v620_v20, 0.0  ;;  %v94_v27 = vsel %vm90_vm4, %v624_v24, 0.0  ;;  %vm91_vm5 = vcmp.eq.s32.totalorder %v82_v23, %v87_v17  ;;  %v259_v17 = vld [vmem:[#allocation9 + $0x20] sm:$0xff] }
  0x16   :  { %v98_v26 = vsel %vm96_vm3, %v93_v22, 0.0  ;;  %v100_v30 = vsel %vm96_vm3, %v94_v27, 0.0  ;;  %v95_v31 = vsel %vm91_vm5, %v629_v28, 0.0  ;;  %222 = vmatpush.msra.mxu1 %v201_v2  ;;  %v124_v22 = vld [vmem:[%s687_s5 + $0x1] sm:$0x1] }
  0x17   :  { %247 = vmatpush.msra.mxu2 %v119_v4  ;;  %v99_v29 = vadd.f32 %v98_v26, %v97_v25  ;;  %v102_v33 = vsel %vm96_vm3, %v95_v31, 0.0 }
  0x18   :  { %v458_v13 = vld [vmem:[#allocation2] ss:$0 sm:$0xff] }
  0x19   :  { %434 = vrot.lane.b32.xlu0 %v433_v11, %s558_s15  ;;  %248 = vmatpush.msra.mxu2 %v118_v3  ;;  %v101_v32 = vadd.f32 %v100_v30, %v99_v29  ;;  %v263_v11 = vld [vmem:[#allocation9 + $0x60] sm:$0xff]  ;;  %v265_v29 = vld [vmem:[%s687_s5] sm:$0x1] }
  0x1a   :  { %444 = vrot.lane.b32.xlu1 %v443_v12, %s558_s15  ;;  %112 = vrot.lane.b32.xlu2 %v458_v13, %s559_s1  ;;  %v262_v12 = vld [vmem:[#allocation9 + $0x50] sm:$0xff]  ;;  %v261_v13 = vld [vmem:[#allocation9 + $0x40] sm:$0xff] }
  0x1b   :  { %249 = vmatpush.msra.mxu2 %v117_v10  ;;  %v103_v35 = vadd.f32 %v102_v33, %v101_v32  ;;  %v264_v10 = vld [vmem:[#allocation9 + $0x70] sm:$0xff] }
  0x1c   :  { %277 = vmatpush.msra.mxu3 %v264_v10 }
  0x1d   :  { %250 = vmatpush.msra.mxu2 %v116_v9  ;;  %v104_v36 = vrot.slane %v103_v35, 4 }
  0x1e   :  { %278 = vmatpush.msra.mxu3 %v263_v11 }
  0x1f   :  { %v105_v37 = vadd.f32 %v104_v36, %v103_v35 }
  0x20   :  { %279 = vmatpush.msra.mxu3 %v262_v12 }
  0x21   :  { %v106_v42 = vrot.slane %v105_v37, 2 }
  0x22   :  { %159 = vrot.lane.b32.xlu2 %v459_v34, %s558_s15  ;;  %280 = vmatpush.msra.mxu3 %v261_v13 }
  0x23   :  { %v107_v43 = vadd.f32 %v106_v42, %v105_v37 }
  0x24   :  { %281 = vmatpush.msra.mxu3 %v260_v14 }
  0x25   :  { %v108_v47 = vrot.slane %v107_v43, 1 }
  0x26   :  { %282 = vmatpush.msra.mxu3 %v259_v17 }
  0x27   :  { %v109_v52 = vadd.f32 %v108_v47, %v107_v43  ;;  %v453_v47 = vpack.i.bf16 %v618_v19, %v620_v20 }
  0x28   :  { %283 = vmatpush.msra.mxu3 %v258_v18 }
  0x2a   :  { %284 = vmatpush.msra.mxu3 %v257_v21 }
  0x74   :  { %v638_v53 = vpop.permute.xlu2 %112 }
  0x75   :  { %v115_v55 = vsel %vm96_vm3, %v109_v52, %v638_v53 }
  0x7c   :  { %v160_v56 = vpop.permute.xlu2 %159 }
  0x83   :  { %v430_v38 = vpop.permute.xlu0 %429 }
  0x84   :  { %v431_v39 = vunpack.i.l.bf16 %v430_v38  ;;  %v440_v40 = vpop.permute.xlu1 %439  ;;  %v432_v41 = vunpack.i.h.bf16 %v430_v38 }
  0x85   :  { %v441_v49 = vunpack.i.l.bf16 %v440_v40  ;;  %v442_v50 = vunpack.i.h.bf16 %v440_v40 }
  0x86   :  { %174 = vmatpush.msra.mxu0 %v431_v39 }
  0x88   :  { %175 = vmatpush.msra.mxu0 %v432_v41 }
  0x8b   :  { %v435_v44 = vpop.permute.xlu0 %434 }
  0x8c   :  { %v436_v45 = vunpack.i.l.bf16 %v435_v44  ;;  %v437_v46 = vunpack.i.h.bf16 %v435_v44  ;;  %v445_v48 = vpop.permute.xlu1 %444 }
  0x8d   :  { %v446_v51 = vunpack.i.l.bf16 %v445_v48  ;;  %v447_v54 = vunpack.i.h.bf16 %v445_v48 }
  0x8e   :  { %176 = vmatpush.msra.mxu0 %v436_v45 }
  0x90   :  { %177 = vmatpush.msra.mxu0 %v437_v46 }
  0x92   :  { %178 = vmatpush.msra.mxu0 %v441_v49 }
  0x94   :  { %179 = vmatpush.msra.mxu0 %v442_v50 }
  0x96   :  { %180 = vmatpush.msra.mxu0 %v446_v51 }
  0x98   :  { %181 = vmatpush.msra.mxu0 %v447_v54  ;;  %v448_v54 = vpack.i.bf16 %v624_v24, %v629_v28  ;;  %v460_v28 = vld [vmem:[%s687_s5 + $0x1] ss:$0 sm:$0xff] }
  0x99   :  { %411 = vmatmul.msk.f32.vlgmr.msra.gmra.mxu0 %vm162_vm6, %v115_v55 }
 0x116   :  { %v183_v57 = vpop.f32.mrf.mxu0 }
 0x117   :  { %v184_v58 = vadd.f32 %v183_v57, %v160_v56 }
 0x119   :  { %v187_v59 = vsel %vm186_vm7, %v184_v58, -inf }
 0x11a   :  { %188 = vmax.xlane.f32.xlu0 %v187_v59 }
 0x12e   :  { %454 = vrot.lane.b32.xlu0 %v453_v47, %s558_s15 }
 0x18d   :  { %v189_v60 = vpop.xlane.xlu0 %188 }
 0x18e   :  { %v190_v61 = vsub.f32 %v184_v58, %v189_v60 }
 0x190   :  { %v191_v62 = vmul.f32 1.442695, %v190_v61 }
 0x192   :  { %461 = vpow2.f32 %v191_v62 }
 0x198   :  { %v462_v63 = vpop.eup %461 }
 0x199   :  { %v193_v0 = vsel %vm186_vm7, %v462_v63, 0.0 }
 0x19a   :  { %194 = vadd.xlane.f32.xlu1 %v193_v0 }
 0x1a0   :  { %v455_v59 = vpop.permute.xlu0 %454 }
 0x1a1   :  { %v456_v62 = vunpack.i.l.bf16 %v455_v59  ;;  %v457_v24 = vunpack.i.h.bf16 %v455_v59 }
 0x20d   :  { %v195_v3 = vpop.xlane.xlu1 %194 }
 0x20e   :  { %463 = vrcp.f32 %v195_v3 }
 0x214   :  { %v464_v4 = vpop.eup %463 }
 0x215   :  { %v197_v5 = vmul.f32 %v464_v4, %v195_v3 }
 0x217   :  { %v198_v6 = vsub.f32 2.0, %v197_v5 }
 0x219   :  { %v199_v7 = vmul.f32 %v464_v4, %v198_v6 }
 0x21b   :  { %v643_v8 = vmul.f32 %v462_v63, %v199_v7 }
 0x21d   :  { %412 = vmatmul.msk.f32.vlgmr.msra.gmra.mxu1 %vm203_vm8, %v643_v8 }
 0x29a   :  { %v224_v9 = vpop.f32.mrf.mxu1 }
 0x29b   :  { %228 = vrot.lane.b32.xlu2 %v224_v9, %s559_s1 }
 0x2f5   :  { %v229_v15 = vpop.permute.xlu2 %228 }
 0x2f6   :  { %v231_v16 = vsel %vm96_vm3, %v109_v52, %v229_v15 }
 0x2f7   :  { %413 = vmatmul.msk.f32.vlgmr.msra.gmra.mxu2 %vm162_vm6, %v231_v16 }
 0x37a   :  { %v252_v23 = vpop.f32.mrf.mxu2 }
 0x37b   :  { %v253_v25 = vadd.f32 %v252_v23, %v124_v22 }
 0x37d   :  { %v255_v26 = vmax.f32 %v253_v25, 0.0 }
 0x37f   :  { %v256_v27 = vsel %vm96_vm3, %v255_v26, %v638_v53 }
 0x380   :  { %414 = vmatmul.msk.f32.vlgmr.msra.gmra.mxu3 %vm162_vm6, %v256_v27 }
 0x403   :  { %v286_v30 = vpop.f32.mrf.mxu3 }
 0x404   :  { %v287_v31 = vadd.f32 %v286_v30, %v265_v29 }
 0x406   :  { %313 = vrot.lane.b32.xlu2 %v287_v31, %s559_s1  ;;  %v415_v32 = vmul.f32 -1.442695, %v287_v31 }
 0x408   :  { %465 = vpow2.f32 %v415_v32 }
 0x40e   :  { %309 = vrot.lane.b32.xlu2 %v287_v31, %s558_s15  ;;  %v466_v33 = vpop.eup %465 }
 0x40f   :  { %v292_v34 = vadd.f32 1.0, %v466_v33 }
 0x411   :  { %467 = vrcp.f32 %v292_v34  ;;  %v304_v40 = vand.u32 2147483648, %v292_v34  ;;  %vm298_vm10 = vweird.f32 %v292_v34  ;;  %v302_v41 = vand.u32 2147483647, %v292_v34 }
 0x413   :  { %v305_v43 = vor.u32 1.1754944e-38, %v304_v40  ;;  %vm303_vm12 = vcmp.eq.f32.partialorder %v302_v41, 8.507059e+37 }
 0x417   :  { %v468_v35 = vpop.eup %467 }
 0x418   :  { %v294_v36 = vmul.f32 %v468_v35, %v292_v34  ;;  %vm299_vm9 = vweird.f32 %v468_v35 }
 0x419   :  { %vm300_vm11 = vmor %vm298_vm10, %vm299_vm9 }
 0x41a   :  { %v295_v37 = vsub.f32 1.0, %v294_v36 }
 0x41c   :  { %v296_v38 = vmul.f32 %v468_v35, %v295_v37 }
 0x41e   :  { %v297_v39 = vadd.f32 %v468_v35, %v296_v38 }
 0x420   :  { %v301_v42 = vsel %vm300_vm11, %v468_v35, %v297_v39 }
 0x421   :  { %v306_v45 = vsel %vm303_vm12, %v305_v43, %v301_v42 }
 0x422   :  { %v323_v55 = vsub.f32 1.0, %v306_v45  ;;  %v329_v57 = vmul.f32 %v306_v45, %v638_v53 }
 0x460   :  { %v314_v44 = vpop.permute.xlu2 %313 }
 0x461   :  { %v316_v46 = vmul.f32 %v314_v44, %v306_v45 }
 0x463   :  { %318 = vrot.lane.b32.xlu2 %v316_v46, %s560_s23 }
 0x468   :  { %v310_v48 = vpop.permute.xlu2 %309 }
 0x469   :  { %v312_v49 = vsub.f32 %v287_v31, %v310_v48 }
 0x4bd   :  { %v319_v50 = vpop.permute.xlu2 %318 }
 0x4be   :  { %v321_v51 = vadd.f32 %v319_v50, %v312_v49 }
 0x4c0   :  { %469 = vtanh.f32 %v321_v51 }
 0x4c6   :  { %v470_v52 = vpop.eup %469 }
 0x4c7   :  { %325 = vrot.lane.b32.xlu2 %v470_v52, %s558_s15 }
 0x4cf   :  { %449 = vrot.lane.b32.xlu2 %v448_v54, %s558_s15 }
 0x4d7   :  { %360 = vrot.lane.b32.xlu2 %v460_v28, %s561_s26 }
 0x521   :  { %v326_v56 = vpop.permute.xlu2 %325 }
 0x522   :  { %v328_v19 = vmul.f32 %v326_v56, %v323_v55 }
 0x524   :  { %v330_v20 = vadd.f32 %v329_v57, %v328_v19 }
 0x526   :  { %332 = vrot.lane.b32.xlu1 %v330_v20, %s558_s15 }
 0x529   :  { %v450_v58 = vpop.permute.xlu2 %449 }
 0x52a   :  { %v451_v60 = vunpack.i.l.bf16 %v450_v58  ;;  %v452_v61 = vunpack.i.h.bf16 %v450_v58 }
 0x52c   :  { %377 = vmatpush.msrb.mxu1 %v451_v60 }
 0x52e   :  { %397 = vrot.lane.b32.xlu1 %v643_v8, %s560_s23  ;;  %378 = vmatpush.msrb.mxu1 %v452_v61 }
 0x530   :  { %379 = vmatpush.msrb.mxu1 %v456_v62 }
 0x531   :  { %v361_v63 = vpop.permute.xlu2 %360 }
 0x532   :  { %380 = vmatpush.msrb.mxu1 %v457_v24 }
 0x598   :  { %v333_v53 = vpop.permute.xlu1 %332 }
 0x599   :  { %336 = vst.msk [vmem:[#allocation2] sm:$0x1] %vm74_vm0, %v333_v53  ;;  %416 = vmatmul.msk.f32.vlgmr.msrb.gmra.mxu1 %vm96_vm3, %v333_v53 }
 0x5a0   :  { %v398_v12 = vpop.permute.xlu1 %397 }
 0x616   :  { %v382_v0 = vpop.f32.mrf.mxu1 }
 0x617   :  { %v383_v1 = vadd.f32 %v382_v0, %v361_v63 }
 0x619   :  { %v385_v2 = vsel %vm74_vm0, %v383_v1, -inf }
 0x61a   :  { %386 = vmax.xlane.f32.xlu2 %v385_v2 }
 0x68d   :  { %v387_v3 = vpop.xlane.xlu2 %386 }
 0x68e   :  { %v388_v4 = vsub.f32 %v383_v1, %v387_v3 }
 0x690   :  { %v389_v5 = vmul.f32 1.442695, %v388_v4 }
 0x692   :  { %471 = vpow2.f32 %v389_v5 }
 0x698   :  { %v472_v6 = vpop.eup %471 }
 0x699   :  { %v391_v7 = vsel %vm74_vm0, %v472_v6, 0.0 }
 0x69a   :  { %392 = vadd.xlane.f32.xlu0 %v391_v7 }
 0x70d   :  { %v393_v8 = vpop.xlane.xlu0 %392 }
 0x70e   :  { %473 = vlog2.f32 %v393_v8 }
 0x714   :  { %v474_v9 = vpop.eup %473 }
 0x715   :  { %v395_v10 = vmul.f32 0.6931472, %v474_v9 }
 0x717   :  { %v396_v11 = vsub.f32 %v388_v4, %v395_v10 }
 0x719   :  { %v400_v13 = vsel %vm96_vm3, %v396_v11, %v330_v20 }
 0x71a   :  { %v401_v14 = vsel %vm162_vm6, %v400_v13, %v398_v12 }
 0x71b   :  { %v403_v15 = vsel %vm402_vm13, %v401_v14, 0.0 }
 0x71c   :  { %404 = vst [vmem:[%s688_s6] sm:$0x1] %v403_v15 }
 0x71d   :  { %409 = vsyncpa [#allocation6], 1 }
 0x71e   :  { %410 = vsyncpa [#allocation8], 1 }

</bundles_post_ra>
